<compile_context>
chip_gen: v7x
topology: tpu7x:2x2x1
jax: 0.10.0
libtpu: 0.0.40
codegen_flags: <defaults>
</compile_context>

<pallas_src>
import functools

import jax
import jax.numpy as jnp
import numpy as np
from jax.experimental import pallas as pl
from jax.experimental.pallas import tpu as pltpu


def _ldam_kernel(x_ref, tgt_ref, m_ref, out_ref, acc_ref, *, s, n_total, tn):
    i = pl.program_id(0)

    @pl.when(i == 0)
    def _init():
        acc_ref[0] = jnp.float32(0.0)

    x = x_ref[...].astype(jnp.float32)        # (tn, C)
    tgt = tgt_ref[...]                        # (tn, 1) int32
    m = m_ref[...].astype(jnp.float32)        # (1, C)
    rows, c = x.shape

    # one-hot(target) built from a lane iota (== scatter_(1, target, 1))
    col = jax.lax.broadcasted_iota(jnp.int32, (rows, c), 1)
    index_f = (col == tgt).astype(jnp.float32)

    # output = x - m[target] on the target column, x elsewhere
    #        = x - m * onehot   (algebraically identical, no XLU reduction)
    logits = s * (x - m * index_f)            # (tn, C)

    # log-softmax cross entropy per row
    row_max = jnp.max(logits, axis=1, keepdims=True)
    lse = jnp.log(jnp.sum(jnp.exp(logits - row_max), axis=1, keepdims=True)) + row_max
    correct = jnp.sum(logits * index_f, axis=1, keepdims=True)
    per_sample = lse - correct                # (tn, 1)

    # mask rows beyond the true batch size (partial last tile)
    row_id = jax.lax.broadcasted_iota(jnp.int32, (rows, 1), 0) + i * tn
    per_sample = jnp.where(row_id < n_total, per_sample, 0.0)

    acc_ref[0] += jnp.sum(per_sample)

    @pl.when(i == pl.num_programs(0) - 1)
    def _finalize():
        mean_loss = acc_ref[0] * (1.0 / n_total)
        out_ref[...] = jnp.full((1, 1), mean_loss, jnp.float32)


def ldam_loss(x, target, cls_num_list, max_m=0.5, s=30.0):
    """LDAM loss forward pass (weight=None), mean reduction."""
    n, c = x.shape
    assert len(cls_num_list) == c
    assert s > 0

    # m_list = 1/sqrt(sqrt(n_cls)), rescaled so max == max_m  (param setup glue)
    m_np = 1.0 / np.sqrt(np.sqrt(np.asarray(cls_num_list, dtype=np.float64)))
    m_np = m_np * (max_m / np.max(m_np))
    m_list = jnp.asarray(m_np, dtype=jnp.float32).reshape(1, c)

    tgt = target.astype(jnp.int32).reshape(n, 1)

    # Row-tile size: keep double-buffered x blocks under ~8 MiB so the kernel
    # fits the scoped-VMEM default on v5e (16 MiB) and leaves headroom on
    # v7x's 64 MiB physical VMEM. Multiple of 8 sublanes, capped at 1024.
    itemsize = jnp.dtype(x.dtype).itemsize
    budget = 8 * 1024 * 1024
    tn = budget // (2 * c * itemsize)
    tn = max(8, min(1024, (tn // 8) * 8))
    tn = min(tn, ((n + 7) // 8) * 8)
    num_tiles = pl.cdiv(n, tn)

    kernel = functools.partial(_ldam_kernel, s=float(s), n_total=n, tn=tn)

    out = pl.pallas_call(
        kernel,
        out_shape=jax.ShapeDtypeStruct((1, 1), jnp.float32),
        grid_spec=pltpu.PrefetchScalarGridSpec(
            num_scalar_prefetch=0,
            grid=(num_tiles,),
            in_specs=[
                pl.BlockSpec((tn, c), lambda i: (i, 0)),   # x tile
                pl.BlockSpec((tn, 1), lambda i: (i, 0)),   # target tile
                pl.BlockSpec((1, c), lambda i: (0, 0)),    # m_list, resident
            ],
            out_specs=pl.BlockSpec((1, 1), lambda i: (0, 0)),
            scratch_shapes=[pltpu.SMEM((1,), jnp.float32)],
        ),
        compiler_params=pltpu.CompilerParams(
            dimension_semantics=("arbitrary",),
        ),
    )(x, tgt, m_list)
    return out[0, 0]


if __name__ == "__main__":
    key = jax.random.PRNGKey(0)
    N, C = 8, 16                      # batch, num_classes
    kx, kt = jax.random.split(key)
    x = jax.random.normal(kx, (N, C), dtype=jnp.float32)
    target = jax.random.randint(kt, (N,), 0, C, dtype=jnp.int32)
    cls_num_list = [int(v) for v in (np.arange(C) * 7 + 5)]  # deterministic counts

    loss = ldam_loss(x, target, cls_num_list, max_m=0.5, s=30.0)
    jax.block_until_ready(loss)
    print("KERNEL_OK")
</pallas_src>

<mosaic_0001>
module attributes {stable_mosaic.version = 11 : i64} {
  func.func @_ldam_kernel(%arg0: i32, %arg1: memref<8x16xf32, #tpu.memory_space<vmem>>, %arg2: memref<8x1xi32, #tpu.memory_space<vmem>>, %arg3: memref<1x16xf32, #tpu.memory_space<vmem>>, %arg4: memref<1x1xf32, #tpu.memory_space<vmem>>, %arg5: memref<1xf32, #tpu.memory_space<smem>>) attributes {dimension_semantics = [#tpu.dimension_semantics<arbitrary>], iteration_bounds = array<i64: 1>, scalar_prefetch = 0 : i64, scratch_operands = 1 : i64, tpu.core_type = #tpu.core_type<tc>, window_params = [{transform_indices = @transform_0, window_bounds = array<i64: 8, 16>}, {transform_indices = @transform_1, window_bounds = array<i64: 8, 1>}, {pipeline_mode = #tpu.pipeline_mode<synchronous>, transform_indices = @transform_2, window_bounds = array<i64: 1, 16>}, {pipeline_mode = #tpu.pipeline_mode<synchronous>, transform_indices = @transform_3, window_bounds = array<i64: 1, 1>}]} {
    %c0_i32 = arith.constant 0 : i32
    %0 = arith.cmpi eq, %arg0, %c0_i32 : i32
    %1 = arith.extui %0 : i1 to i32
    %c0_i32_0 = arith.constant 0 : i32
    %2 = arith.cmpi ne, %1, %c0_i32_0 : i32
    scf.if %2 {
      %cst_16 = arith.constant 0.000000e+00 : f32
      %c0_17 = arith.constant 0 : index
      %47 = memref.load %arg5[%c0_17] : memref<1xf32, #tpu.memory_space<smem>>
      memref.store %cst_16, %arg5[%c0_17] : memref<1xf32, #tpu.memory_space<smem>>
    } else {
    }
    %c0 = arith.constant 0 : index
    %c0_1 = arith.constant 0 : index
    %3 = vector.load %arg1[%c0, %c0_1] : memref<8x16xf32, #tpu.memory_space<vmem>>, vector<8x16xf32>
    %c0_2 = arith.constant 0 : index
    %c0_3 = arith.constant 0 : index
    %4 = vector.load %arg2[%c0_2, %c0_3] : memref<8x1xi32, #tpu.memory_space<vmem>>, vector<8x1xi32>
    %c0_4 = arith.constant 0 : index
    %c0_5 = arith.constant 0 : index
    %5 = vector.load %arg3[%c0_4, %c0_5] : memref<1x16xf32, #tpu.memory_space<vmem>>, vector<1x16xf32>
    %6 = tpu.iota {dimensions = array<i32: 1>} : vector<8x16xi32>
    %7 = vector.broadcast %4 : vector<8x1xi32> to vector<8x16xi32>
    %8 = arith.cmpi eq, %6, %7 : vector<8x16xi32>
    %9 = arith.extui %8 : vector<8x16xi1> to vector<8x16xi32>
    %10 = arith.sitofp %9 : vector<8x16xi32> to vector<8x16xf32>
    %11 = vector.broadcast %5 : vector<1x16xf32> to vector<8x16xf32>
    %12 = arith.mulf %11, %10 : vector<8x16xf32>
    %13 = arith.subf %3, %12 : vector<8x16xf32>
    %cst = arith.constant 3.000000e+01 : f32
    %14 = vector.broadcast %cst : f32 to vector<8x16xf32>
    %15 = arith.mulf %14, %13 : vector<8x16xf32>
    %cst_6 = arith.constant dense<0xFF800000> : vector<8xf32>
    %16 = vector.multi_reduction <maximumf>, %15, %cst_6 [1] : vector<8x16xf32> to vector<8xf32>
    %17 = vector.shape_cast %16 : vector<8xf32> to vector<8x1xf32>
    %18 = vector.broadcast %17 : vector<8x1xf32> to vector<8x16xf32>
    %19 = arith.subf %15, %18 : vector<8x16xf32>
    %20 = math.exp %19 : vector<8x16xf32>
    %cst_7 = arith.constant dense<0.000000e+00> : vector<8xf32>
    %21 = vector.multi_reduction <add>, %20, %cst_7 [1] : vector<8x16xf32> to vector<8xf32>
    %22 = vector.shape_cast %21 : vector<8xf32> to vector<8x1xf32>
    %23 = math.log %22 : vector<8x1xf32>
    %24 = arith.addf %23, %17 : vector<8x1xf32>
    %25 = arith.mulf %15, %10 : vector<8x16xf32>
    %cst_8 = arith.constant dense<0.000000e+00> : vector<8xf32>
    %26 = vector.multi_reduction <add>, %25, %cst_8 [1] : vector<8x16xf32> to vector<8xf32>
    %27 = vector.shape_cast %26 : vector<8xf32> to vector<8x1xf32>
    %28 = arith.subf %24, %27 : vector<8x1xf32>
    %29 = tpu.iota {dimensions = array<i32: 0>} : vector<8x1xi32>
    %c8_i32 = arith.constant 8 : i32
    %30 = arith.muli %arg0, %c8_i32 : i32
    %31 = vector.broadcast %30 : i32 to vector<8x1xi32>
    %32 = arith.addi %29, %31 : vector<8x1xi32>
    %c8_i32_9 = arith.constant 8 : i32
    %33 = vector.broadcast %c8_i32_9 : i32 to vector<8x1xi32>
    %34 = arith.cmpi slt, %32, %33 : vector<8x1xi32>
    %cst_10 = arith.constant 0.000000e+00 : f32
    %35 = vector.broadcast %cst_10 : f32 to vector<8x1xf32>
    %36 = arith.select %34, %28, %35 : vector<8x1xi1>, vector<8x1xf32>
    %c0_11 = arith.constant 0 : index
    %37 = memref.load %arg5[%c0_11] : memref<1xf32, #tpu.memory_space<smem>>
    %38 = vector.shape_cast %36 : vector<8x1xf32> to vector<1x8x1xf32>
    %cst_12 = arith.constant dense<0.000000e+00> : vector<1xf32>
    %39 = vector.multi_reduction <add>, %38, %cst_12 [1, 2] : vector<1x8x1xf32> to vector<1xf32>
    %40 = vector.shape_cast %39 : vector<1xf32> to vector<1x1x1xf32>
    %41 = vector.extract %40[0, 0, 0] : f32 from vector<1x1x1xf32>
    %42 = arith.addf %37, %41 : f32
    %c0_13 = arith.constant 0 : index
    %43 = memref.load %arg5[%c0_13] : memref<1xf32, #tpu.memory_space<smem>>
    memref.store %42, %arg5[%c0_13] : memref<1xf32, #tpu.memory_space<smem>>
    %c0_i32_14 = arith.constant 0 : i32
    %44 = arith.cmpi eq, %arg0, %c0_i32_14 : i32
    %45 = arith.extui %44 : i1 to i32
    %c0_i32_15 = arith.constant 0 : i32
    %46 = arith.cmpi ne, %45, %c0_i32_15 : i32
    scf.if %46 {
      %c0_16 = arith.constant 0 : index
      %47 = memref.load %arg5[%c0_16] : memref<1xf32, #tpu.memory_space<smem>>
      %cst_17 = arith.constant 1.250000e-01 : f32
      %48 = arith.mulf %47, %cst_17 : f32
      %49 = vector.broadcast %48 : f32 to vector<1x1xf32>
      %c0_18 = arith.constant 0 : index
      %c0_19 = arith.constant 0 : index
      %50 = vector.load %arg4[%c0_18, %c0_19] : memref<1x1xf32, #tpu.memory_space<vmem>>, vector<1x1xf32>
      tpu.vector_store %arg4[%c0_18, %c0_19], %49 {strides = array<i32>} : memref<1x1xf32, #tpu.memory_space<vmem>>, vector<1x1xf32>,
    } else {
    }
    return
  }
  func.func @transform_0(%arg0: i32) -> (i32, i32) {
    %c0_i32 = arith.constant 0 : i32
    %c0_i32_0 = arith.constant 0 : i32
    return %arg0, %c0_i32 : i32, i32
  }
  func.func @transform_1(%arg0: i32) -> (i32, i32) {
    %c0_i32 = arith.constant 0 : i32
    %c0_i32_0 = arith.constant 0 : i32
    return %arg0, %c0_i32 : i32, i32
  }
  func.func @transform_2(%arg0: i32) -> (i32, i32) {
    %c0_i32 = arith.constant 0 : i32
    %c0_i32_0 = arith.constant 0 : i32
    %c0_i32_1 = arith.constant 0 : i32
    return %c0_i32, %c0_i32_0 : i32, i32
  }
  func.func @transform_3(%arg0: i32) -> (i32, i32) {
    %c0_i32 = arith.constant 0 : i32
    %c0_i32_0 = arith.constant 0 : i32
    %c0_i32_1 = arith.constant 0 : i32
    return %c0_i32, %c0_i32_0 : i32, i32
  }
}

</mosaic_0001>

<bundles_post_ra>
// kernel: tpu_custom_call.1
= control target key start
LH: loop header
LB: loop body
LE: loop exit
PB: predicated region body
PF: predicated region fallthrough
CT: control target
= control target key end

     0   :  { %v139_v1 = vmov 0   ;;  %s183_s0 = inlined_call_operand.vmem [shape: f32[8,16], index: 0, kind: input, shape index: {}]   ;;  %s184_s1 = inlined_call_operand.vmem [shape: s32[8,1], index: 1, kind: input, shape index: {}]   ;;  %s185_s2 = inlined_call_operand.vmem [shape: f32[1,16], index: 2, kind: input, shape index: {}]   ;;  %s186_s3 = inlined_call_operand.hbm [shape: f32[1,1], index: 3, kind: output, shape index: {}]  }
   0x1   :  { %v22_v0 = vld [vmem:[%s184_s1] sm:$0xff]  ;;  %110 = vset.pattern.permute.xlu0 %v139_v1 }
   0x2   :  { %8 = vsyncpa [#allocation4], 0  ;;  %27 = vperm.xlu0 %110, %v22_v0   ;;  %v24_v2 = vlaneseq  ;;  %v104_v4 = vld [vmem:[%s185_s2] ss:$0 sm:$0xff]  ;;  %v140_v7 = vmov 0.0   ;;  %vm41_vm1 = vcmask 130048  }
   0x3   :  { %v21_v6 = vld [vmem:[%s183_s0] sm:$0xff]  ;;  %vm67_vm2 = vcmask 7168   ;;  %s141_s0 = smov [#allocation3]   ;;  %vm87_vm3 = vcmask 0  }
   0x4   :  { %v25_v3 = vand.u32 127, %v24_v2  ;;  %s95_s1 = sshll.u32 %s141_s0, 4  ;;  %s96_s1 = int_to_ptr.vmem [resolvable:$true] %s95_s1 }
   0x5   :  { %s115_s19 = scalar_lea.vmem %s96_s1, 16  ;;  %s119_s20 = scalar_lea.vmem %s96_s1, 32 }
   0x6   :  { %p116_p0 = scmp.ne.s32.totalorder %s96_s1, %s115_s19  ;;  %p120_p1 = scmp.lt.s32.totalorder %s96_s1, %s96_s1 }
   0x7   :  { %p121_p2 = scmp.lt.s32.totalorder %s119_s20, %s115_s19 }
   0x9   :  { %p122_p3 = por %p121_p2, %p120_p1 }
   0xb   :  { %p123_p4 = pnand %p122_p3, %p116_p0 }
  0x81   :  { %v28_v5 = vpop.permute.xlu0 %27 }
  0x82   :  { %vm29_vm0 = vcmp.eq.s32.totalorder %v25_v3, %v28_v5 }
  0x83   :  { %v103_v8 = vsel %vm29_vm0, 1.0, %v140_v7 }
  0x84   :  { %v38_v9 = vmul.f32 %v104_v4, %v103_v8 }
  0x86   :  { %v39_v10 = vsub.f32 %v21_v6, %v38_v9 }
  0x88   :  { %v40_v11 = vmul.f32 30.0, %v39_v10 }
  0x8a   :  { %v42_v12 = vsel %vm41_vm1, %v40_v11, -inf  ;;  %v54_v18 = vmul.f32 %v103_v8, %v40_v11 }
  0x8b   :  { %43 = vmax.xlane.f32.xlu0 %v42_v12 }
  0x8c   :  { %v55_v19 = vsel %vm41_vm1, %v54_v18, 0.0 }
 0x118   :  { %v44_v13 = vpop.xlane.xlu0 %43 }
 0x119   :  { %v45_v14 = vsub.f32 %v40_v11, %v44_v13 }
 0x11b   :  { %v46_v15 = vmul.f32 1.442695, %v45_v14 }
 0x11d   :  { %111 = vpow2.f32 %v46_v15 }
 0x127   :  { %v112_v16 = vpop.eup %111 }
 0x128   :  { %v48_v17 = vsel %vm41_vm1, %v112_v16, 0.0 }
 0x129   :  { %49 = vadd.xlane.f32.xlu1 %v48_v17 }
 0x12d   :  { %56 = vadd.xlane.f32.xlu1 %v55_v19 }
 0x1b6   :  { %v50_v20 = vpop.xlane.xlu1 %49 }
 0x1b7   :  { %113 = vlog2.f32 %v50_v20 }
 0x1ba   :  { %v57_v24 = vpop.xlane.xlu1 %56 }
 0x1c1   :  { %v114_v21 = vpop.eup %113 }
 0x1c2   :  { %v52_v22 = vmul.f32 0.6931472, %v114_v21 }
 0x1c4   :  { %v53_v23 = vadd.f32 %v52_v22, %v44_v13 }
 0x1c6   :  { %v58_v25 = vsub.f32 %v53_v23, %v57_v24 }
 0x1c8   :  { %v68_v26 = vsel %vm67_vm2, %v58_v25, 0.0 }
 0x1c9   :  { %69 = vadd.xlane.f32.xlu1 %v68_v26 }
 0x256   :  { %v70_v27 = vpop.xlane.xlu1 %69 }
 0x257   :  { %v71_v28 = vrot.slane %v70_v27, 4 }
 0x259   :  { %v72_v29 = vadd.f32 %v71_v28, %v70_v27 }
 0x25b   :  { %v73_v30 = vrot.slane %v72_v29, 2 }
 0x25d   :  { %v74_v31 = vadd.f32 %v73_v30, %v72_v29 }
 0x25f   :  { %v75_v32 = vrot.slane %v74_v31, 1 }
 0x261   :  { %v76_v33 = vadd.f32 %v75_v32, %v74_v31 }
 0x263   :  { %105 = vpush %v76_v33 }
 0x294   :  { %s106_s2 = spop %105 }
 0x295   :  { %s85_s18 = smul.f32 0.125, %s106_s2 }
 0x297   :  { %v86_v34 = vstv %s85_s18 }
 0x298   :  { %88 = vst.msk [vmem:[#allocation3] sm:$0x1] %vm87_vm3, %v86_v34 }
 0x299   :  { %126 = shalt.err (!%p123_p4)
}
 0x29a   :  { %s127_s23 = scalar_lea.hbm %s186_s3, 16 }
 0x29b   :  { %p128_p5 = scmp.ne.s32.totalorder %s186_s3, %s127_s23  ;;  %p131_p6 = scmp.lt.u32.totalorder %s127_s23, %s186_s3 }
 0x29d   :  { %p133_p7 = pnand %p131_p6, %p128_p5 }
 0x29f   :  { %136 = shalt.err (!%p133_p7)
}
 0x2a0   :  { %98 = dma.vmem_to_hbm [thread:$0]  %s96_s1, 16, %s186_s3, [#allocation4]  }
 0x2a1   :  { %137 = dma.done.wait [#allocation4], 16  }
 0x2a2   :  { %138 = vsyncadd [#allocation4], 4294967280 }
 0x2a3   :  { %102 = vsyncpa [#allocation4], 1 }

</bundles_post_ra>
